<compile_context>
chip_gen: v7x
topology: tpu7x:2x2x1
jax: 0.10.0
libtpu: 0.0.40
codegen_flags: <defaults>
</compile_context>

<pallas_src>
import functools

import jax
import jax.numpy as jnp
from jax import lax
from jax.experimental import pallas as pl
from jax.experimental.pallas import tpu as pltpu


def _round_up(x, m):
    return (x + m - 1) // m * m


def rnn_kernel(xp_ref, whh_ref, wfc_ref, bfc_ref, out_ref, h_scratch, *,
               batch, steps, t_real, t_pad, dot_dtype):
    """One grid step = one time-chunk of `steps` timesteps.

    xp_ref  : [steps*batch, Hp]  pre-projected input (x@W_ih + b), time-major
    whh_ref : [Hp, Hp] (dot_dtype)    wfc_ref : [Hp, Op] (dot_dtype)
    bfc_ref : [1, Op]  f32
    out_ref : [batch, Op] f32         h_scratch : [batch, Hp] f32 (persists)
    """
    chunk = pl.program_id(0)
    n_chunks = pl.num_programs(0)

    @pl.when(chunk == 0)
    def _():
        # h_0 = zeros (PyTorch nn.RNN with hx=None)
        h_scratch[...] = jnp.zeros_like(h_scratch)

    w_hh = whh_ref[...]          # resident weights, loaded once per chunk
    h = h_scratch[...]           # value-carried across the unrolled steps

    needs_mask = (t_pad != t_real)

    def step(t_local, h):
        if isinstance(t_local, int):                     # static (unrolled) path
            x_t = xp_ref[t_local * batch:(t_local + 1) * batch, :]
        else:                                            # fori_loop path
            start = pl.multiple_of(t_local * batch, 8)   # batch is a multiple of 8
            x_t = xp_ref[pl.ds(start, batch), :]
        h_new = jnp.tanh(
            x_t + jnp.dot(h.astype(dot_dtype), w_hh,
                          preferred_element_type=jnp.float32))
        if needs_mask:
            t_global = chunk * steps + t_local
            h_new = jnp.where(t_global < t_real, h_new, h)  # free VPU select
        return h_new

    if steps <= 16:
        # Full unroll: LLO scheduler gets cross-step visibility.
        for t in range(steps):
            h = step(t, h)
    else:
        # Partial unroll bounds live ranges / code size for long chunks.
        h = lax.fori_loop(0, steps, step, h, unroll=8)

    h_scratch[...] = h           # store once per chunk

    @pl.when(chunk == n_chunks - 1)
    def _():
        logits = (jnp.dot(h.astype(dot_dtype), wfc_ref[...],
                          preferred_element_type=jnp.float32)
                  + bfc_ref[...])                        # [batch, Op]
        out_ref[...] = jax.nn.sigmoid(logits)


def rnn_model_forward(token_ids, params, *, dot_dtype=jnp.bfloat16,
                      chunk_vmem_bytes=2 * 1024 * 1024):
    """token_ids: int32 [B, T].  Returns sigmoid(fc(last hidden)) as [B, O]."""
    emb_table = params["embedding"]        # [V, E]
    w_ih = params["w_ih"]                  # [E, H]
    w_hh = params["w_hh"]                  # [H, H]
    b = params["b"]                        # [1, H]  (b_ih + b_hh)
    w_fc = params["w_fc"]                  # [H, O]
    b_fc = params["b_fc"]                  # [1, O]

    B, T = token_ids.shape
    E, H = w_ih.shape
    O = w_fc.shape[1]

    # Lane/sublane-dense padded sizes.
    Bp = _round_up(B, 8)
    Hp = _round_up(H, 128)
    Op = _round_up(O, 128)

    # Zero-padded weights.  Zero padding keeps padded hidden LANES exactly 0;
    # padded batch ROWS pick up tanh(bias) but are sliced off at the end.
    w_ih_p = jnp.zeros((E, Hp), jnp.float32).at[:, :H].set(w_ih)
    b_p = jnp.zeros((1, Hp), jnp.float32).at[:, :H].set(b)
    w_hh_p = jnp.zeros((Hp, Hp), jnp.float32).at[:H, :H].set(w_hh).astype(dot_dtype)
    w_fc_p = jnp.zeros((Hp, Op), jnp.float32).at[:H, :O].set(w_fc).astype(dot_dtype)
    b_fc_p = jnp.zeros((1, Op), jnp.float32).at[:, :O].set(b_fc)

    # Time-chunk size from a VMEM byte budget (NOT a divisor-of-T rule):
    # whole sequence in one chunk whenever it fits.
    bytes_per_step = Bp * Hp * 4
    Tt = max(1, min(T, chunk_vmem_bytes // bytes_per_step))
    T_pad = _round_up(T, Tt)
    n_chunks = T_pad // Tt
    rows = Tt * Bp

    # TODO(synk): embedding gather (token id -> row) stays in plain JAX; a
    # scalar-prefetch / DMA-gather Pallas version is not worth it at this size.
    x_emb = emb_table[token_ids]                                  # [B, T, E]

    # Lane-dense streamed input: fold the (time-parallel) input projection and
    # bias here so each serial in-kernel step is only h = tanh(x_t + h@W_hh).
    x_proj = x_emb @ w_ih_p + b_p                                 # [B, T, Hp] f32
    x_proj = jnp.pad(x_proj, ((0, Bp - B), (0, T_pad - T), (0, 0)))
    x_flat = jnp.transpose(x_proj, (1, 0, 2)).reshape(T_pad * Bp, Hp)  # time-major

    kernel = functools.partial(rnn_kernel, batch=Bp, steps=Tt, t_real=T,
                               t_pad=T_pad, dot_dtype=dot_dtype)

    out = pl.pallas_call(
        kernel,
        out_shape=jax.ShapeDtypeStruct((Bp, Op), jnp.float32),
        grid_spec=pltpu.PrefetchScalarGridSpec(
            num_scalar_prefetch=0,
            grid=(n_chunks,),
            in_specs=[
                # streamed, lane-dense pre-projected time-chunk
                pl.BlockSpec((rows, Hp), lambda i: (i, 0)),
                # weights / bias: whole array, resident across grid steps
                pl.BlockSpec((Hp, Hp), lambda i: (0, 0)),
                pl.BlockSpec((Hp, Op), lambda i: (0, 0)),
                pl.BlockSpec((1, Op), lambda i: (0, 0)),
            ],
            out_specs=pl.BlockSpec((Bp, Op), lambda i: (0, 0)),
            scratch_shapes=[pltpu.VMEM((Bp, Hp), jnp.float32)],
        ),
        compiler_params=pltpu.CompilerParams(
            dimension_semantics=("arbitrary",)),   # time is serial
    )(x_flat, w_hh_p, w_fc_p, b_fc_p)

    return out[:B, :O]


def reference_forward(token_ids, params):
    """Pure-JAX f32 reference mirroring the PyTorch forward."""
    x = params["embedding"][token_ids]                 # [B, T, E]
    B, T, E = x.shape
    H = params["w_hh"].shape[0]
    h = jnp.zeros((B, H), jnp.float32)
    for t in range(T):
        h = jnp.tanh(x[:, t, :] @ params["w_ih"] + h @ params["w_hh"]
                     + params["b"])
    logits = h @ params["w_fc"] + params["b_fc"]
    return jax.nn.sigmoid(logits)


def init_params(key, vocab_size, embedding_dim, hidden_dim, output_dim):
    ks = jax.random.split(key, 7)
    scale = 0.1
    return {
        "embedding": scale * jax.random.normal(ks[0], (vocab_size, embedding_dim), jnp.float32),
        "w_ih": scale * jax.random.normal(ks[1], (embedding_dim, hidden_dim), jnp.float32),
        "w_hh": scale * jax.random.normal(ks[2], (hidden_dim, hidden_dim), jnp.float32),
        # single bias = b_ih + b_hh (they always appear summed)
        "b": scale * jax.random.normal(ks[3], (1, hidden_dim), jnp.float32),
        "w_fc": scale * jax.random.normal(ks[4], (hidden_dim, output_dim), jnp.float32),
        "b_fc": scale * jax.random.normal(ks[5], (1, output_dim), jnp.float32),
    }


if __name__ == "__main__":
    VOCAB, EMB, HID, OUT = 50, 16, 32, 4
    B, T = 2, 8

    key = jax.random.PRNGKey(0)
    pkey, ikey = jax.random.split(key)
    params = init_params(pkey, VOCAB, EMB, HID, OUT)
    token_ids = jax.random.randint(ikey, (B, T), 0, VOCAB, dtype=jnp.int32)

    out = rnn_model_forward(token_ids, params)         # bf16 MXU operands
    out = jax.block_until_ready(out)

    ref = reference_forward(token_ids, params)         # f32 reference
    assert out.shape == (B, OUT), out.shape
    # bf16 operands in the recurrence/head -> relaxed tolerance vs f32 ref.
    assert jnp.allclose(out, ref, atol=2e-2, rtol=2e-2), (out, ref)

    print("KERNEL_OK")
</pallas_src>

<mosaic_0001>
module attributes {stable_mosaic.version = 11 : i64} {
  func.func @rnn_kernel(%arg0: i32, %arg1: memref<64x128xf32, #tpu.memory_space<vmem>>, %arg2: memref<128x128xbf16, #tpu.memory_space<vmem>>, %arg3: memref<128x128xbf16, #tpu.memory_space<vmem>>, %arg4: memref<1x128xf32, #tpu.memory_space<vmem>>, %arg5: memref<8x128xf32, #tpu.memory_space<vmem>>, %arg6: memref<8x128xf32, #tpu.memory_space<vmem>>) attributes {dimension_semantics = [#tpu.dimension_semantics<arbitrary>], iteration_bounds = array<i64: 1>, scalar_prefetch = 0 : i64, scratch_operands = 1 : i64, tpu.core_type = #tpu.core_type<tc>, window_params = [{transform_indices = @transform_0, window_bounds = array<i64: 64, 128>}, {pipeline_mode = #tpu.pipeline_mode<synchronous>, transform_indices = @transform_1, window_bounds = array<i64: 128, 128>}, {pipeline_mode = #tpu.pipeline_mode<synchronous>, transform_indices = @transform_2, window_bounds = array<i64: 128, 128>}, {pipeline_mode = #tpu.pipeline_mode<synchronous>, transform_indices = @transform_3, window_bounds = array<i64: 1, 128>}, {pipeline_mode = #tpu.pipeline_mode<synchronous>, transform_indices = @transform_4, window_bounds = array<i64: 8, 128>}]} {
    %c0_i32 = arith.constant 0 : i32
    %0 = arith.cmpi eq, %arg0, %c0_i32 : i32
    %1 = arith.extui %0 : i1 to i32
    %c0_i32_0 = arith.constant 0 : i32
    %2 = arith.cmpi ne, %1, %c0_i32_0 : i32
    scf.if %2 {
      %cst_24 = arith.constant 0.000000e+00 : f32
      %49 = vector.broadcast %cst_24 : f32 to vector<8x128xf32>
      %c0_25 = arith.constant 0 : index
      %c0_26 = arith.constant 0 : index
      %50 = vector.load %arg6[%c0_25, %c0_26] : memref<8x128xf32, #tpu.memory_space<vmem>>, vector<8x128xf32>
      tpu.vector_store %arg6[%c0_25, %c0_26], %49 {strides = array<i32>} : memref<8x128xf32, #tpu.memory_space<vmem>>, vector<8x128xf32>,
    } else {
    }
    %c0 = arith.constant 0 : index
    %c0_1 = arith.constant 0 : index
    %3 = vector.load %arg2[%c0, %c0_1] : memref<128x128xbf16, #tpu.memory_space<vmem>>, vector<128x128xbf16>
    %c0_2 = arith.constant 0 : index
    %c0_3 = arith.constant 0 : index
    %4 = vector.load %arg6[%c0_2, %c0_3] : memref<8x128xf32, #tpu.memory_space<vmem>>, vector<8x128xf32>
    %c0_4 = arith.constant 0 : index
    %c0_5 = arith.constant 0 : index
    %5 = vector.load %arg1[%c0_4, %c0_5] : memref<64x128xf32, #tpu.memory_space<vmem>>, vector<8x128xf32>
    %6 = arith.truncf %4 : vector<8x128xf32> to vector<8x128xbf16>
    %cst = arith.constant dense<0.000000e+00> : vector<8x128xf32>
    %7 = tpu.matmul %6, %3, %cst {dimension_numbers = #tpu.dot_dimension_numbers<[1], [0], [0], [1], [0, 0, 1, 1], [], []>} : vector<8x128xbf16>, vector<128x128xbf16>, vector<8x128xf32> -> vector<8x128xf32>
    %8 = arith.addf %5, %7 : vector<8x128xf32>
    %9 = math.tanh %8 : vector<8x128xf32>
    %c8 = arith.constant 8 : index
    %c0_6 = arith.constant 0 : index
    %10 = vector.load %arg1[%c8, %c0_6] : memref<64x128xf32, #tpu.memory_space<vmem>>, vector<8x128xf32>
    %11 = arith.truncf %9 : vector<8x128xf32> to vector<8x128xbf16>
    %cst_7 = arith.constant dense<0.000000e+00> : vector<8x128xf32>
    %12 = tpu.matmul %11, %3, %cst_7 {dimension_numbers = #tpu.dot_dimension_numbers<[1], [0], [0], [1], [0, 0, 1, 1], [], []>} : vector<8x128xbf16>, vector<128x128xbf16>, vector<8x128xf32> -> vector<8x128xf32>
    %13 = arith.addf %10, %12 : vector<8x128xf32>
    %14 = math.tanh %13 : vector<8x128xf32>
    %c16 = arith.constant 16 : index
    %c0_8 = arith.constant 0 : index
    %15 = vector.load %arg1[%c16, %c0_8] : memref<64x128xf32, #tpu.memory_space<vmem>>, vector<8x128xf32>
    %16 = arith.truncf %14 : vector<8x128xf32> to vector<8x128xbf16>
    %cst_9 = arith.constant dense<0.000000e+00> : vector<8x128xf32>
    %17 = tpu.matmul %16, %3, %cst_9 {dimension_numbers = #tpu.dot_dimension_numbers<[1], [0], [0], [1], [0, 0, 1, 1], [], []>} : vector<8x128xbf16>, vector<128x128xbf16>, vector<8x128xf32> -> vector<8x128xf32>
    %18 = arith.addf %15, %17 : vector<8x128xf32>
    %19 = math.tanh %18 : vector<8x128xf32>
    %c24 = arith.constant 24 : index
    %c0_10 = arith.constant 0 : index
    %20 = vector.load %arg1[%c24, %c0_10] : memref<64x128xf32, #tpu.memory_space<vmem>>, vector<8x128xf32>
    %21 = arith.truncf %19 : vector<8x128xf32> to vector<8x128xbf16>
    %cst_11 = arith.constant dense<0.000000e+00> : vector<8x128xf32>
    %22 = tpu.matmul %21, %3, %cst_11 {dimension_numbers = #tpu.dot_dimension_numbers<[1], [0], [0], [1], [0, 0, 1, 1], [], []>} : vector<8x128xbf16>, vector<128x128xbf16>, vector<8x128xf32> -> vector<8x128xf32>
    %23 = arith.addf %20, %22 : vector<8x128xf32>
    %24 = math.tanh %23 : vector<8x128xf32>
    %c32 = arith.constant 32 : index
    %c0_12 = arith.constant 0 : index
    %25 = vector.load %arg1[%c32, %c0_12] : memref<64x128xf32, #tpu.memory_space<vmem>>, vector<8x128xf32>
    %26 = arith.truncf %24 : vector<8x128xf32> to vector<8x128xbf16>
    %cst_13 = arith.constant dense<0.000000e+00> : vector<8x128xf32>
    %27 = tpu.matmul %26, %3, %cst_13 {dimension_numbers = #tpu.dot_dimension_numbers<[1], [0], [0], [1], [0, 0, 1, 1], [], []>} : vector<8x128xbf16>, vector<128x128xbf16>, vector<8x128xf32> -> vector<8x128xf32>
    %28 = arith.addf %25, %27 : vector<8x128xf32>
    %29 = math.tanh %28 : vector<8x128xf32>
    %c40 = arith.constant 40 : index
    %c0_14 = arith.constant 0 : index
    %30 = vector.load %arg1[%c40, %c0_14] : memref<64x128xf32, #tpu.memory_space<vmem>>, vector<8x128xf32>
    %31 = arith.truncf %29 : vector<8x128xf32> to vector<8x128xbf16>
    %cst_15 = arith.constant dense<0.000000e+00> : vector<8x128xf32>
    %32 = tpu.matmul %31, %3, %cst_15 {dimension_numbers = #tpu.dot_dimension_numbers<[1], [0], [0], [1], [0, 0, 1, 1], [], []>} : vector<8x128xbf16>, vector<128x128xbf16>, vector<8x128xf32> -> vector<8x128xf32>
    %33 = arith.addf %30, %32 : vector<8x128xf32>
    %34 = math.tanh %33 : vector<8x128xf32>
    %c48 = arith.constant 48 : index
    %c0_16 = arith.constant 0 : index
    %35 = vector.load %arg1[%c48, %c0_16] : memref<64x128xf32, #tpu.memory_space<vmem>>, vector<8x128xf32>
    %36 = arith.truncf %34 : vector<8x128xf32> to vector<8x128xbf16>
    %cst_17 = arith.constant dense<0.000000e+00> : vector<8x128xf32>
    %37 = tpu.matmul %36, %3, %cst_17 {dimension_numbers = #tpu.dot_dimension_numbers<[1], [0], [0], [1], [0, 0, 1, 1], [], []>} : vector<8x128xbf16>, vector<128x128xbf16>, vector<8x128xf32> -> vector<8x128xf32>
    %38 = arith.addf %35, %37 : vector<8x128xf32>
    %39 = math.tanh %38 : vector<8x128xf32>
    %c56 = arith.constant 56 : index
    %c0_18 = arith.constant 0 : index
    %40 = vector.load %arg1[%c56, %c0_18] : memref<64x128xf32, #tpu.memory_space<vmem>>, vector<8x128xf32>
    %41 = arith.truncf %39 : vector<8x128xf32> to vector<8x128xbf16>
    %cst_19 = arith.constant dense<0.000000e+00> : vector<8x128xf32>
    %42 = tpu.matmul %41, %3, %cst_19 {dimension_numbers = #tpu.dot_dimension_numbers<[1], [0], [0], [1], [0, 0, 1, 1], [], []>} : vector<8x128xbf16>, vector<128x128xbf16>, vector<8x128xf32> -> vector<8x128xf32>
    %43 = arith.addf %40, %42 : vector<8x128xf32>
    %44 = math.tanh %43 : vector<8x128xf32>
    %c0_20 = arith.constant 0 : index
    %c0_21 = arith.constant 0 : index
    %45 = vector.load %arg6[%c0_20, %c0_21] : memref<8x128xf32, #tpu.memory_space<vmem>>, vector<8x128xf32>
    tpu.vector_store %arg6[%c0_20, %c0_21], %44 {strides = array<i32>} : memref<8x128xf32, #tpu.memory_space<vmem>>, vector<8x128xf32>,
    %c0_i32_22 = arith.constant 0 : i32
    %46 = arith.cmpi eq, %arg0, %c0_i32_22 : i32
    %47 = arith.extui %46 : i1 to i32
    %c0_i32_23 = arith.constant 0 : i32
    %48 = arith.cmpi ne, %47, %c0_i32_23 : i32
    scf.if %48 {
      %49 = arith.truncf %44 : vector<8x128xf32> to vector<8x128xbf16>
      %c0_24 = arith.constant 0 : index
      %c0_25 = arith.constant 0 : index
      %50 = vector.load %arg3[%c0_24, %c0_25] : memref<128x128xbf16, #tpu.memory_space<vmem>>, vector<128x128xbf16>
      %cst_26 = arith.constant dense<0.000000e+00> : vector<8x128xf32>
      %51 = tpu.matmul %49, %50, %cst_26 {dimension_numbers = #tpu.dot_dimension_numbers<[1], [0], [0], [1], [0, 0, 1, 1], [], []>} : vector<8x128xbf16>, vector<128x128xbf16>, vector<8x128xf32> -> vector<8x128xf32>
      %c0_27 = arith.constant 0 : index
      %c0_28 = arith.constant 0 : index
      %52 = vector.load %arg4[%c0_27, %c0_28] : memref<1x128xf32, #tpu.memory_space<vmem>>, vector<1x128xf32>
      %53 = vector.broadcast %52 : vector<1x128xf32> to vector<8x128xf32>
      %54 = arith.addf %51, %53 : vector<8x128xf32>
      %55 = arith.negf %54 : vector<8x128xf32>
      %56 = math.exp %55 : vector<8x128xf32>
      %cst_29 = arith.constant 1.000000e+00 : f32
      %57 = vector.broadcast %cst_29 : f32 to vector<8x128xf32>
      %58 = arith.addf %57, %56 : vector<8x128xf32>
      %59 = arith.divf %57, %58 : vector<8x128xf32>
      %c0_30 = arith.constant 0 : index
      %c0_31 = arith.constant 0 : index
      %60 = vector.load %arg5[%c0_30, %c0_31] : memref<8x128xf32, #tpu.memory_space<vmem>>, vector<8x128xf32>
      tpu.vector_store %arg5[%c0_30, %c0_31], %59 {strides = array<i32>} : memref<8x128xf32, #tpu.memory_space<vmem>>, vector<8x128xf32>,
    } else {
    }
    return
  }
  func.func @transform_0(%arg0: i32) -> (i32, i32) {
    %c0_i32 = arith.constant 0 : i32
    %c0_i32_0 = arith.constant 0 : i32
    return %arg0, %c0_i32 : i32, i32
  }
  func.func @transform_1(%arg0: i32) -> (i32, i32) {
    %c0_i32 = arith.constant 0 : i32
    %c0_i32_0 = arith.constant 0 : i32
    %c0_i32_1 = arith.constant 0 : i32
    return %c0_i32, %c0_i32_0 : i32, i32
  }
  func.func @transform_2(%arg0: i32) -> (i32, i32) {
    %c0_i32 = arith.constant 0 : i32
    %c0_i32_0 = arith.constant 0 : i32
    %c0_i32_1 = arith.constant 0 : i32
    return %c0_i32, %c0_i32_0 : i32, i32
  }
  func.func @transform_3(%arg0: i32) -> (i32, i32) {
    %c0_i32 = arith.constant 0 : i32
    %c0_i32_0 = arith.constant 0 : i32
    %c0_i32_1 = arith.constant 0 : i32
    return %c0_i32, %c0_i32_0 : i32, i32
  }
  func.func @transform_4(%arg0: i32) -> (i32, i32) {
    %c0_i32 = arith.constant 0 : i32
    %c0_i32_0 = arith.constant 0 : i32
    %c0_i32_1 = arith.constant 0 : i32
    return %c0_i32, %c0_i32_0 : i32, i32
  }
}

</mosaic_0001>

<bundles_post_ra>
// kernel: tpu_custom_call.1
= control target key start
LH: loop header
LB: loop body
LE: loop exit
PB: predicated region body
PF: predicated region fallthrough
CT: control target
= control target key end

     0   :  { %9 = vsyncpa [#allocation4], 0  ;;  %s1304_s0 = inlined_call_operand.hbm [shape: f32[64,128], index: 0, kind: input, shape index: {}]   ;;  %s1305_s1 = inlined_call_operand.hbm [shape: bf16[128,128], index: 1, kind: input, shape index: {}]   ;;  %s1306_s2 = inlined_call_operand.hbm [shape: bf16[128,128], index: 2, kind: input, shape index: {}]   ;;  %s1307_s3 = inlined_call_operand.vmem [shape: f32[1,128], index: 3, kind: input, shape index: {}]   ;;  %s1308_s4 = inlined_call_operand.hbm [shape: f32[8,128], index: 4, kind: output, shape index: {}]  }
   0x1   :  { %10 = vsyncpa [#allocation7], 0 }
   0x2   :  { %11 = vsyncpa [#allocation5], 0  ;;  %s1041_s15 = smov [#allocation6]   ;;  %s947_s19 = scalar_lea.hbm %s1305_s1, 1024 }
   0x3   :  { %s29_s16 = sshll.u32 %s1041_s15, 4  ;;  %p948_p0 = scmp.ne.s32.totalorder %s1305_s1, %s947_s19  ;;  %s30_s16 = int_to_ptr.vmem [resolvable:$true] %s29_s16 }
   0x4   :  { %p951_p1 = scmp.lt.u32.totalorder %s947_s19, %s1305_s1 }
   0x6   :  { %p953_p2 = pnand %p951_p1, %p948_p0 }
   0x8   :  { %956 = shalt.err (!%p953_p2)
}
   0x9   :  { %s957_s24 = scalar_lea.vmem %s30_s16, 1024  ;;  %p962_p4 = scmp.lt.s32.totalorder %s30_s16, %s30_s16 }
   0xa   :  { %p958_p3 = scmp.ne.s32.totalorder %s30_s16, %s957_s24  ;;  %p963_p5 = scmp.lt.s32.totalorder %s957_s24, %s957_s24 }
   0xc   :  { %p964_p6 = por %p963_p5, %p962_p4 }
   0xe   :  { %p965_p7 = pnand %p964_p6, %p958_p3 }
  0x10   :  { %968 = shalt.err (!%p965_p7)
}
  0x11   :  { %s1042_s25 = smov 64   ;;  %s1043_s26 = smov 4  }
  0x12   :  { %35 = dma.hbm_to_vmem [thread:$0]  %s1305_s1, 1024, %s30_s16, [#allocation7], %s1042_s25, %s1042_s25, %s1043_s26  }
  0x13   :  { %s1044_s29 = smov [#allocation3]   ;;  %s969_s7 = scalar_lea.hbm %s1304_s0, 1024 }
  0x14   :  { %s17_s30 = sshll.u32 %s1044_s29, 4  ;;  %p970_p8 = scmp.ne.s32.totalorder %s1304_s0, %s969_s7  ;;  %s18_s30 = int_to_ptr.vmem [resolvable:$true] %s17_s30 }
  0x15   :  { %p973_p9 = scmp.lt.u32.totalorder %s969_s7, %s1304_s0 }
  0x17   :  { %p975_p10 = pnand %p973_p9, %p970_p8 }
  0x19   :  { %978 = shalt.err (!%p975_p10)
}
  0x1a   :  { %s979_s12 = scalar_lea.vmem %s18_s30, 1024  ;;  %p984_p12 = scmp.lt.s32.totalorder %s18_s30, %s18_s30 }
  0x1b   :  { %p980_p11 = scmp.ne.s32.totalorder %s18_s30, %s979_s12  ;;  %p985_p13 = scmp.lt.s32.totalorder %s979_s12, %s979_s12 }
  0x1d   :  { %p986_p0 = por %p985_p13, %p984_p12 }
  0x1f   :  { %p987_p1 = pnand %p986_p0, %p980_p11 }
  0x21   :  { %990 = shalt.err (!%p987_p1)
}
  0x22   :  { %s1045_s1 = smov 128   ;;  %s1046_s13 = smov 8  }
  0x23   :  { %23 = dma.hbm_to_vmem [thread:$0]  %s1304_s0, 1024, %s18_s30, [#allocation4], %s1045_s1, %s1045_s1, %s1046_s13  }
  0x24   :  { %s1047_s16 = smov [#allocation8]   ;;  %s991_s20 = scalar_lea.hbm %s1306_s2, 1024 }
  0x25   :  { %s41_s17 = sshll.u32 %s1047_s16, 4  ;;  %p992_p2 = scmp.ne.s32.totalorder %s1306_s2, %s991_s20  ;;  %s42_s17 = int_to_ptr.vmem [resolvable:$true] %s41_s17 }
  0x26   :  { %p995_p3 = scmp.lt.u32.totalorder %s991_s20, %s1306_s2 }
  0x28   :  { %p997_p4 = pnand %p995_p3, %p992_p2 }
  0x2a   :  { %1000 = shalt.err (!%p997_p4)
}
  0x2b   :  { %s1001_s27 = scalar_lea.vmem %s42_s17, 1024  ;;  %p1006_p6 = scmp.lt.s32.totalorder %s42_s17, %s42_s17 }
  0x2c   :  { %p1002_p5 = scmp.ne.s32.totalorder %s42_s17, %s1001_s27  ;;  %p1007_p7 = scmp.lt.s32.totalorder %s1001_s27, %s1001_s27 }
  0x2e   :  { %p1008_p8 = por %p1007_p7, %p1006_p6 }
  0x30   :  { %p1009_p9 = pnand %p1008_p8, %p1002_p5 }
  0x32   :  { %1012 = shalt.err (!%p1009_p9)
}
  0x33   :  { %47 = dma.hbm_to_vmem [thread:$0]  %s1306_s2, 1024, %s42_s17, [#allocation7], %s1042_s25, %s1042_s25, %s1043_s26  }
  0x34   :  { %1035 = dma.done.wait [#allocation4], 1024  }
  0x35   :  { %1036 = vsyncadd [#allocation4], 4294966272 }
  0x36   :  { %1037 = dma.done.wait [#allocation7], 2048  }
  0x37   :  { %1038 = vsyncadd [#allocation7], 4294965248  ;;  %v1048_v0 = vmov 0.0   ;;  %vm1049_vm0 = vmmov 0   ;;  %v1125_v1 = vld [vmem:[#allocation6] sm:$0xff]   ;;  %v1128_v2 = vld [vmem:[#allocation6 + $0x8] sm:$0xff]  }
  0x38   :  { %720 = vmatprep.subr.bf16.mxu0 %v1048_v0  ;;  %736 = vmatprep.mubr.msk.bf16.mxu0 %vm1049_vm0, %v1048_v0  ;;  %v1134_v3 = vld [vmem:[#allocation6 + $0x10] sm:$0xff]   ;;  %v1139_v4 = vld [vmem:[#allocation6 + $0x18] sm:$0xff]   ;;  %v1146_v5 = vld [vmem:[#allocation6 + $0x20] sm:$0xff]   ;;  %v1050_v9 = vmov 0.0|0.0   ;;  %s1051_s26 = smov [#allocation9]  }
  0x39   :  { %740 = vmatprep.subr.bf16.mxu1 %v1048_v0  ;;  %756 = vmatprep.mubr.msk.bf16.mxu1 %vm1049_vm0, %v1048_v0  ;;  %v1152_v6 = vld [vmem:[#allocation6 + $0x28] sm:$0xff]   ;;  %v1158_v7 = vld [vmem:[#allocation6 + $0x30] sm:$0xff]   ;;  %v1164_v8 = vld [vmem:[#allocation6 + $0x38] sm:$0xff]   ;;  %s611_s29 = sshll.u32 %s1051_s26, 4  ;;  %s612_s29 = int_to_ptr.vmem [resolvable:$true] %s611_s29 }
  0x3a   :  { %721 = vmatpush3.bf16.msra.mxu0 %v1125_v1  ;;  %741 = vmatpush3.bf16.msra.mxu1 %v1125_v1  ;;  %v82_v10 = vld [vmem:[#allocation3] sm:$0xff]  ;;  %v174_v18 = vld [vmem:[#allocation3 + $0x8] sm:$0xff]  ;;  %v218_v26 = vld [vmem:[#allocation3 + $0x10] sm:$0xff]  ;;  %s1013_s30 = scalar_lea.vmem %s612_s29, 128  ;;  %p1018_p11 = scmp.lt.s32.totalorder %s612_s29, %s612_s29 }
  0x3b   :  { %722 = vmatprep.subr.bf16.mxu0 %v1048_v0  ;;  %742 = vmatprep.subr.bf16.mxu1 %v1048_v0  ;;  %v262_v34 = vld [vmem:[#allocation3 + $0x18] sm:$0xff]  ;;  %v306_v42 = vld [vmem:[#allocation3 + $0x20] sm:$0xff]  ;;  %v350_v50 = vld [vmem:[#allocation3 + $0x28] sm:$0xff]  ;;  %p1014_p10 = scmp.ne.s32.totalorder %s612_s29, %s1013_s30  ;;  %p1019_p12 = scmp.lt.s32.totalorder %s1013_s30, %s1013_s30 }
  0x3c   :  { %v919_v58 = vld [vmem:[#allocation8] sm:$0xff]   ;;  %v920_v59 = vld [vmem:[#allocation8 + $0x8] sm:$0xff]   ;;  %v921_v60 = vld [vmem:[#allocation8 + $0x10] sm:$0xff]  }
  0x3d   :  { %v922_v61 = vld [vmem:[#allocation8 + $0x18] sm:$0xff]   ;;  %v394_v62 = vld [vmem:[#allocation3 + $0x30] sm:$0xff]  ;;  %p1020_p13 = por %p1019_p12, %p1018_p11 }
  0x3e   :  { %723 = vmatpush3.bf16.msra.mxu0 %v1128_v2  ;;  %743 = vmatpush3.bf16.msra.mxu1 %v1128_v2 }
  0x3f   :  { %724 = vmatprep.subr.bf16.mxu0 %v1048_v0  ;;  %744 = vmatprep.subr.bf16.mxu1 %v1048_v0  ;;  %p1021_p0 = pnand %p1020_p13, %p1014_p10 }
  0x42   :  { %725 = vmatpush3.bf16.msra.mxu0 %v1134_v3  ;;  %745 = vmatpush3.bf16.msra.mxu1 %v1134_v3 }
  0x43   :  { %726 = vmatprep.subr.bf16.mxu0 %v1048_v0  ;;  %746 = vmatprep.subr.bf16.mxu1 %v1048_v0 }
  0x46   :  { %727 = vmatpush3.bf16.msra.mxu0 %v1139_v4  ;;  %747 = vmatpush3.bf16.msra.mxu1 %v1139_v4 }
  0x47   :  { %728 = vmatprep.subr.bf16.mxu0 %v1048_v0  ;;  %748 = vmatprep.subr.bf16.mxu1 %v1048_v0 }
  0x4a   :  { %729 = vmatpush3.bf16.msra.mxu0 %v1146_v5  ;;  %749 = vmatpush3.bf16.msra.mxu1 %v1146_v5 }
  0x4b   :  { %730 = vmatprep.subr.bf16.mxu0 %v1048_v0  ;;  %750 = vmatprep.subr.bf16.mxu1 %v1048_v0 }
  0x4e   :  { %731 = vmatpush3.bf16.msra.mxu0 %v1152_v6  ;;  %751 = vmatpush3.bf16.msra.mxu1 %v1152_v6 }
  0x4f   :  { %732 = vmatprep.subr.bf16.mxu0 %v1048_v0  ;;  %752 = vmatprep.subr.bf16.mxu1 %v1048_v0 }
  0x52   :  { %733 = vmatpush3.bf16.msra.mxu0 %v1158_v7  ;;  %753 = vmatpush3.bf16.msra.mxu1 %v1158_v7 }
  0x53   :  { %734 = vmatprep.subr.bf16.mxu0 %v1048_v0  ;;  %754 = vmatprep.subr.bf16.mxu1 %v1048_v0 }
  0x56   :  { %735 = vmatpush3.bf16.msra.mxu0 %v1164_v8  ;;  %755 = vmatpush3.bf16.msra.mxu1 %v1164_v8 }
  0x57   :  { %760 = vmatprep.subr.bf16.mxu0 %v1048_v0  ;;  %780 = vmatprep.subr.bf16.mxu1 %v1048_v0 }
  0x59   :  { %737 = vmatmul.mubr.bf16.vlgmr.msra.gmra.mrb[0].mxu0 %v1050_v9  ;;  %v925_v9 = vld [vmem:[#allocation8 + $0x30] sm:$0xff]  }
  0x5a   :  { %761 = vmatpush3.bf16.msra.mxu0 %v1125_v1  ;;  %776 = vmatprep.mubr.msk.bf16.mxu0 %vm1049_vm0, %v1048_v0 }
  0x5b   :  { %762 = vmatprep.subr.bf16.mxu0 %v1048_v0 }
  0x5e   :  { %763 = vmatpush3.bf16.msra.mxu0 %v1128_v2 }
  0x5f   :  { %764 = vmatprep.subr.bf16.mxu0 %v1048_v0 }
  0x62   :  { %765 = vmatpush3.bf16.msra.mxu0 %v1134_v3 }
  0x63   :  { %766 = vmatprep.subr.bf16.mxu0 %v1048_v0 }
  0x66   :  { %767 = vmatpush3.bf16.msra.mxu0 %v1139_v4 }
  0x67   :  { %768 = vmatprep.subr.bf16.mxu0 %v1048_v0 }
  0x6a   :  { %769 = vmatpush3.bf16.msra.mxu0 %v1146_v5 }
  0x6b   :  { %770 = vmatprep.subr.bf16.mxu0 %v1048_v0 }
  0x6e   :  { %771 = vmatpush3.bf16.msra.mxu0 %v1152_v6 }
  0x6f   :  { %772 = vmatprep.subr.bf16.mxu0 %v1048_v0 }
  0x72   :  { %773 = vmatpush3.bf16.msra.mxu0 %v1158_v7 }
  0x73   :  { %774 = vmatprep.subr.bf16.mxu0 %v1048_v0 }
  0x76   :  { %775 = vmatpush3.bf16.msra.mxu0 %v1164_v8 }
  0x77   :  { %800 = vmatprep.subr.bf16.mxu0 %v1048_v0 }
 0x12c   :  { %v166_v11 = vpop.f32.mrb[0].mxu0 }
 0x12d   :  { %v172_v12 = vadd.f32 %v166_v11, %v82_v10  ;;  %v738_v13 = vpop.f32.mrb[1].mxu0  ;;  %v926_v10 = vld [vmem:[#allocation8 + $0x38] sm:$0xff]  }
 0x12e   :  { %v169_v14 = vpop.f32.mrb[2].mxu0  ;;  %v438_v11 = vld [vmem:[#allocation3 + $0x38] sm:$0xff] }
 0x12f   :  { %927 = vtanh.f32 %v172_v12  ;;  %v739_v15 = vpop.f32.mrb[3].mxu0 }
 0x139   :  { %v928_v16 = vpop.eup %927 }
 0x13a   :  { %v175_v17 = vpack.c.bf16 %v928_v16, %v928_v16 }
 0x13c   :  { %757 = vmatmul.mubr.bf16.vlgmr.msra.gmra.mrb[0].mxu1 %v175_v17 }
 0x13d   :  { %781 = vmatpush3.bf16.msra.mxu1 %v1125_v1  ;;  %796 = vmatprep.mubr.msk.bf16.mxu1 %vm1049_vm0, %v1048_v0 }
 0x13e   :  { %782 = vmatprep.subr.bf16.mxu1 %v1048_v0 }
 0x141   :  { %783 = vmatpush3.bf16.msra.mxu1 %v1128_v2 }
 0x142   :  { %784 = vmatprep.subr.bf16.mxu1 %v1048_v0 }
 0x145   :  { %785 = vmatpush3.bf16.msra.mxu1 %v1134_v3 }
 0x146   :  { %786 = vmatprep.subr.bf16.mxu1 %v1048_v0 }
 0x149   :  { %787 = vmatpush3.bf16.msra.mxu1 %v1139_v4 }
 0x14a   :  { %788 = vmatprep.subr.bf16.mxu1 %v1048_v0 }
 0x14d   :  { %789 = vmatpush3.bf16.msra.mxu1 %v1146_v5 }
 0x14e   :  { %790 = vmatprep.subr.bf16.mxu1 %v1048_v0 }
 0x151   :  { %791 = vmatpush3.bf16.msra.mxu1 %v1152_v6 }
 0x152   :  { %792 = vmatprep.subr.bf16.mxu1 %v1048_v0 }
 0x155   :  { %793 = vmatpush3.bf16.msra.mxu1 %v1158_v7 }
 0x156   :  { %794 = vmatprep.subr.bf16.mxu1 %v1048_v0 }
 0x159   :  { %795 = vmatpush3.bf16.msra.mxu1 %v1164_v8 }
 0x15a   :  { %820 = vmatprep.subr.bf16.mxu1 %v1048_v0 }
 0x20f   :  { %v210_v19 = vpop.f32.mrb[0].mxu1 }
 0x210   :  { %v216_v20 = vadd.f32 %v210_v19, %v174_v18  ;;  %v758_v21 = vpop.f32.mrb[1].mxu1  ;;  %v629_v19 = vld [vmem:[%s1307_s3] ss:$0 sm:$0xff] }
 0x211   :  { %v213_v22 = vpop.f32.mrb[2].mxu1 }
 0x212   :  { %929 = vtanh.f32 %v216_v20  ;;  %v759_v23 = vpop.f32.mrb[3].mxu1 }
 0x21c   :  { %v930_v24 = vpop.eup %929 }
 0x21d   :  { %v219_v25 = vpack.c.bf16 %v930_v24, %v930_v24 }
 0x21f   :  { %777 = vmatmul.mubr.bf16.vlgmr.msra.gmra.mrb[4].mxu0 %v219_v25 }
 0x220   :  { %801 = vmatpush3.bf16.msra.mxu0 %v1125_v1  ;;  %816 = vmatprep.mubr.msk.bf16.mxu0 %vm1049_vm0, %v1048_v0 }
 0x221   :  { %802 = vmatprep.subr.bf16.mxu0 %v1048_v0 }
 0x224   :  { %803 = vmatpush3.bf16.msra.mxu0 %v1128_v2 }
 0x225   :  { %804 = vmatprep.subr.bf16.mxu0 %v1048_v0 }
 0x228   :  { %805 = vmatpush3.bf16.msra.mxu0 %v1134_v3 }
 0x229   :  { %806 = vmatprep.subr.bf16.mxu0 %v1048_v0 }
 0x22c   :  { %807 = vmatpush3.bf16.msra.mxu0 %v1139_v4 }
 0x22d   :  { %808 = vmatprep.subr.bf16.mxu0 %v1048_v0 }
 0x230   :  { %809 = vmatpush3.bf16.msra.mxu0 %v1146_v5 }
 0x231   :  { %810 = vmatprep.subr.bf16.mxu0 %v1048_v0 }
 0x234   :  { %811 = vmatpush3.bf16.msra.mxu0 %v1152_v6 }
 0x235   :  { %812 = vmatprep.subr.bf16.mxu0 %v1048_v0 }
 0x238   :  { %813 = vmatpush3.bf16.msra.mxu0 %v1158_v7 }
 0x239   :  { %814 = vmatprep.subr.bf16.mxu0 %v1048_v0 }
 0x23c   :  { %815 = vmatpush3.bf16.msra.mxu0 %v1164_v8 }
 0x23d   :  { %840 = vmatprep.subr.bf16.mxu0 %v1048_v0 }
 0x2f2   :  { %v254_v27 = vpop.f32.mrb[4].mxu0 }
 0x2f3   :  { %v260_v28 = vadd.f32 %v254_v27, %v218_v26  ;;  %v778_v29 = vpop.f32.mrb[5].mxu0 }
 0x2f4   :  { %v257_v30 = vpop.f32.mrb[6].mxu0 }
 0x2f5   :  { %931 = vtanh.f32 %v260_v28  ;;  %v779_v31 = vpop.f32.mrb[7].mxu0 }
 0x2ff   :  { %v932_v32 = vpop.eup %931 }
 0x300   :  { %v263_v33 = vpack.c.bf16 %v932_v32, %v932_v32 }
 0x302   :  { %797 = vmatmul.mubr.bf16.vlgmr.msra.gmra.mrb[4].mxu1 %v263_v33 }
 0x303   :  { %821 = vmatpush3.bf16.msra.mxu1 %v1125_v1  ;;  %836 = vmatprep.mubr.msk.bf16.mxu1 %vm1049_vm0, %v1048_v0 }
 0x304   :  { %822 = vmatprep.subr.bf16.mxu1 %v1048_v0 }
 0x307   :  { %823 = vmatpush3.bf16.msra.mxu1 %v1128_v2 }
 0x308   :  { %824 = vmatprep.subr.bf16.mxu1 %v1048_v0 }
 0x30b   :  { %825 = vmatpush3.bf16.msra.mxu1 %v1134_v3 }
 0x30c   :  { %826 = vmatprep.subr.bf16.mxu1 %v1048_v0 }
 0x30f   :  { %827 = vmatpush3.bf16.msra.mxu1 %v1139_v4 }
 0x310   :  { %828 = vmatprep.subr.bf16.mxu1 %v1048_v0 }
 0x313   :  { %829 = vmatpush3.bf16.msra.mxu1 %v1146_v5 }
 0x314   :  { %830 = vmatprep.subr.bf16.mxu1 %v1048_v0 }
 0x317   :  { %831 = vmatpush3.bf16.msra.mxu1 %v1152_v6 }
 0x318   :  { %832 = vmatprep.subr.bf16.mxu1 %v1048_v0 }
 0x31b   :  { %833 = vmatpush3.bf16.msra.mxu1 %v1158_v7 }
 0x31c   :  { %834 = vmatprep.subr.bf16.mxu1 %v1048_v0 }
 0x31f   :  { %835 = vmatpush3.bf16.msra.mxu1 %v1164_v8 }
 0x320   :  { %860 = vmatprep.subr.bf16.mxu1 %v1048_v0 }
 0x3d5   :  { %v298_v35 = vpop.f32.mrb[4].mxu1 }
 0x3d6   :  { %v304_v36 = vadd.f32 %v298_v35, %v262_v34  ;;  %v798_v37 = vpop.f32.mrb[5].mxu1 }
 0x3d7   :  { %v301_v38 = vpop.f32.mrb[6].mxu1 }
 0x3d8   :  { %933 = vtanh.f32 %v304_v36  ;;  %v799_v39 = vpop.f32.mrb[7].mxu1 }
 0x3e2   :  { %v934_v40 = vpop.eup %933 }
 0x3e3   :  { %v307_v41 = vpack.c.bf16 %v934_v40, %v934_v40 }
 0x3e5   :  { %817 = vmatmul.mubr.bf16.vlgmr.msra.gmra.mrb[8].mxu0 %v307_v41 }
 0x3e6   :  { %841 = vmatpush3.bf16.msra.mxu0 %v1125_v1  ;;  %856 = vmatprep.mubr.msk.bf16.mxu0 %vm1049_vm0, %v1048_v0 }
 0x3e7   :  { %842 = vmatprep.subr.bf16.mxu0 %v1048_v0 }
 0x3ea   :  { %843 = vmatpush3.bf16.msra.mxu0 %v1128_v2 }
 0x3eb   :  { %844 = vmatprep.subr.bf16.mxu0 %v1048_v0 }
 0x3ee   :  { %845 = vmatpush3.bf16.msra.mxu0 %v1134_v3 }
 0x3ef   :  { %846 = vmatprep.subr.bf16.mxu0 %v1048_v0 }
 0x3f2   :  { %847 = vmatpush3.bf16.msra.mxu0 %v1139_v4 }
 0x3f3   :  { %848 = vmatprep.subr.bf16.mxu0 %v1048_v0 }
 0x3f6   :  { %849 = vmatpush3.bf16.msra.mxu0 %v1146_v5 }
 0x3f7   :  { %850 = vmatprep.subr.bf16.mxu0 %v1048_v0 }
 0x3fa   :  { %851 = vmatpush3.bf16.msra.mxu0 %v1152_v6 }
 0x3fb   :  { %852 = vmatprep.subr.bf16.mxu0 %v1048_v0 }
 0x3fe   :  { %853 = vmatpush3.bf16.msra.mxu0 %v1158_v7 }
 0x3ff   :  { %854 = vmatprep.subr.bf16.mxu0 %v1048_v0 }
 0x402   :  { %855 = vmatpush3.bf16.msra.mxu0 %v1164_v8 }
 0x403   :  { %880 = vmatprep.subr.bf16.mxu0 %v1048_v0 }
 0x4b8   :  { %v342_v43 = vpop.f32.mrb[8].mxu0 }
 0x4b9   :  { %v348_v44 = vadd.f32 %v342_v43, %v306_v42  ;;  %v818_v45 = vpop.f32.mrb[9].mxu0 }
 0x4ba   :  { %v345_v46 = vpop.f32.mrb[10].mxu0 }
 0x4bb   :  { %935 = vtanh.f32 %v348_v44  ;;  %v819_v47 = vpop.f32.mrb[11].mxu0 }
 0x4c5   :  { %v936_v48 = vpop.eup %935 }
 0x4c6   :  { %v351_v49 = vpack.c.bf16 %v936_v48, %v936_v48 }
 0x4c8   :  { %837 = vmatmul.mubr.bf16.vlgmr.msra.gmra.mrb[8].mxu1 %v351_v49 }
 0x4c9   :  { %861 = vmatpush3.bf16.msra.mxu1 %v1125_v1  ;;  %876 = vmatprep.mubr.msk.bf16.mxu1 %vm1049_vm0, %v1048_v0 }
 0x4ca   :  { %862 = vmatprep.subr.bf16.mxu1 %v1048_v0 }
 0x4cd   :  { %863 = vmatpush3.bf16.msra.mxu1 %v1128_v2 }
 0x4ce   :  { %864 = vmatprep.subr.bf16.mxu1 %v1048_v0 }
 0x4d1   :  { %865 = vmatpush3.bf16.msra.mxu1 %v1134_v3 }
 0x4d2   :  { %866 = vmatprep.subr.bf16.mxu1 %v1048_v0 }
 0x4d5   :  { %867 = vmatpush3.bf16.msra.mxu1 %v1139_v4 }
 0x4d6   :  { %868 = vmatprep.subr.bf16.mxu1 %v1048_v0 }
 0x4d9   :  { %869 = vmatpush3.bf16.msra.mxu1 %v1146_v5 }
 0x4da   :  { %870 = vmatprep.subr.bf16.mxu1 %v1048_v0 }
 0x4dd   :  { %871 = vmatpush3.bf16.msra.mxu1 %v1152_v6 }
 0x4de   :  { %872 = vmatprep.subr.bf16.mxu1 %v1048_v0 }
 0x4e1   :  { %873 = vmatpush3.bf16.msra.mxu1 %v1158_v7  ;;  %v923_v7 = vld [vmem:[#allocation8 + $0x20] sm:$0xff]  }
 0x4e2   :  { %874 = vmatprep.subr.bf16.mxu1 %v1048_v0 }
 0x4e5   :  { %875 = vmatpush3.bf16.msra.mxu1 %v1164_v8  ;;  %v924_v8 = vld [vmem:[#allocation8 + $0x28] sm:$0xff]  }
 0x59b   :  { %v386_v51 = vpop.f32.mrb[8].mxu1 }
 0x59c   :  { %v392_v52 = vadd.f32 %v386_v51, %v350_v50  ;;  %v838_v53 = vpop.f32.mrb[9].mxu1 }
 0x59d   :  { %v389_v54 = vpop.f32.mrb[10].mxu1 }
 0x59e   :  { %937 = vtanh.f32 %v392_v52  ;;  %v839_v55 = vpop.f32.mrb[11].mxu1 }
 0x5a8   :  { %v938_v56 = vpop.eup %937 }
 0x5a9   :  { %v395_v57 = vpack.c.bf16 %v938_v56, %v938_v56 }
 0x5ab   :  { %857 = vmatmul.mubr.bf16.vlgmr.msra.gmra.mrb[12].mxu0 %v395_v57 }
 0x5ac   :  { %896 = vmatprep.mubr.msk.bf16.mxu0 %vm1049_vm0, %v1048_v0  ;;  %881 = vmatpush3.bf16.msra.mxu0 %v919_v58 }
 0x5ad   :  { %882 = vmatprep.subr.bf16.mxu0 %v1048_v0 }
 0x5b0   :  { %883 = vmatpush3.bf16.msra.mxu0 %v920_v59 }
 0x5b1   :  { %884 = vmatprep.subr.bf16.mxu0 %v1048_v0 }
 0x5b4   :  { %885 = vmatpush3.bf16.msra.mxu0 %v921_v60 }
 0x5b5   :  { %886 = vmatprep.subr.bf16.mxu0 %v1048_v0 }
 0x5b8   :  { %887 = vmatpush3.bf16.msra.mxu0 %v922_v61 }
 0x5b9   :  { %888 = vmatprep.subr.bf16.mxu0 %v1048_v0 }
 0x5bc   :  { %889 = vmatpush3.bf16.msra.mxu0 %v923_v7 }
 0x5bd   :  { %890 = vmatprep.subr.bf16.mxu0 %v1048_v0 }
 0x5c0   :  { %891 = vmatpush3.bf16.msra.mxu0 %v924_v8 }
 0x5c1   :  { %892 = vmatprep.subr.bf16.mxu0 %v1048_v0 }
 0x5c4   :  { %893 = vmatpush3.bf16.msra.mxu0 %v925_v9 }
 0x5c5   :  { %894 = vmatprep.subr.bf16.mxu0 %v1048_v0 }
 0x5c8   :  { %895 = vmatpush3.bf16.msra.mxu0 %v926_v10 }
 0x67e   :  { %v430_v63 = vpop.f32.mrb[12].mxu0 }
 0x67f   :  { %v436_v1 = vadd.f32 %v430_v63, %v394_v62  ;;  %v858_v2 = vpop.f32.mrb[13].mxu0 }
 0x680   :  { %v433_v3 = vpop.f32.mrb[14].mxu0 }
 0x681   :  { %939 = vtanh.f32 %v436_v1  ;;  %v859_v4 = vpop.f32.mrb[15].mxu0 }
 0x68b   :  { %v940_v5 = vpop.eup %939 }
 0x68c   :  { %v439_v6 = vpack.c.bf16 %v940_v5, %v940_v5 }
 0x68e   :  { %877 = vmatmul.mubr.bf16.vlgmr.msra.gmra.mrb[12].mxu1 %v439_v6 }
 0x761   :  { %v474_v12 = vpop.f32.mrb[12].mxu1 }
 0x762   :  { %v480_v13 = vadd.f32 %v474_v12, %v438_v11  ;;  %v878_v14 = vpop.f32.mrb[13].mxu1 }
 0x763   :  { %v477_v15 = vpop.f32.mrb[14].mxu1 }
 0x764   :  { %941 = vtanh.f32 %v480_v13  ;;  %v879_v16 = vpop.f32.mrb[15].mxu1 }
 0x76e   :  { %v942_v17 = vpop.eup %941 }
 0x76f   :  { %v486_v18 = vpack.c.bf16 %v942_v17, %v942_v17 }
 0x771   :  { %897 = vmatmul.mubr.bf16.vlgmr.msra.gmra.mrb[16].mxu0 %v486_v18 }
 0x844   :  { %v592_v20 = vpop.f32.mrb[16].mxu0 }
 0x845   :  { %v593_v21 = vadd.f32 %v629_v19, %v592_v20  ;;  %v898_v22 = vpop.f32.mrb[17].mxu0 }
 0x846   :  { %v595_v0 = vpop.f32.mrb[18].mxu0 }
 0x847   :  { %v638_v23 = vmul.f32 -1.442695, %v593_v21  ;;  %v899_v24 = vpop.f32.mrb[19].mxu0 }
 0x849   :  { %943 = vpow2.f32 %v638_v23 }
 0x853   :  { %v944_v25 = vpop.eup %943 }
 0x854   :  { %v601_v26 = vadd.f32 1.0, %v944_v25 }
 0x856   :  { %945 = vrcp.f32 %v601_v26 }
 0x860   :  { %v946_v27 = vpop.eup %945 }
 0x861   :  { %604 = vst [vmem:[#allocation9] sm:$0xff] %v946_v27 }
 0x862   :  { %1024 = shalt.err (!%p1021_p0)
}
 0x863   :  { %s1025_s6 = scalar_lea.hbm %s1308_s4, 128 }
 0x864   :  { %p1026_p1 = scmp.ne.s32.totalorder %s1308_s4, %s1025_s6  ;;  %p1029_p2 = scmp.lt.u32.totalorder %s1025_s6, %s1308_s4 }
 0x866   :  { %p1031_p3 = pnand %p1029_p2, %p1026_p1 }
 0x868   :  { %1034 = shalt.err (!%p1031_p3)
}
 0x869   :  { %614 = dma.vmem_to_hbm [thread:$0]  %s612_s29, 128, %s1308_s4, [#allocation5]  }
 0x86a   :  { %1039 = dma.done.wait [#allocation5], 128  }
 0x86b   :  { %1040 = vsyncadd [#allocation5], 4294967168 }
 0x86c   :  { %618 = vsyncpa [#allocation4], 1 }
 0x86d   :  { %619 = vsyncpa [#allocation7], 1 }
 0x86e   :  { %620 = vsyncpa [#allocation5], 1 }

</bundles_post_ra>
